<compile_context>
chip_gen: v6e
topology: v6e:2x2x1
jax: 0.10.0
libtpu: 0.0.40
codegen_flags: <defaults>
</compile_context>

<pallas_src>
import functools

import jax
import jax.numpy as jnp
from jax.experimental import pallas as pl
from jax.experimental.pallas import tpu as pltpu

_LANES = 128
_SUBLANES = 8
_X_BLOCK_BYTES = 2 << 20   # ~2 MiB x-block => ~6 MiB total double-buffered VMEM


def _vae_bottleneck_kernel(latent, x_ref, g_ref, o_ref):
    # x_ref: (bb, 2*latent) = [means | stddev], g_ref: (1, latent), o_ref: (bb, latent)
    # latent is a multiple of 128, so both slices are lane-tile aligned (no relayout).
    m = x_ref[:, 0:latent]
    s = x_ref[:, latent:2 * latent]
    g = g_ref[...]
    # Native-dtype FMA (f32 in the demo; bf16 stays bf16 on v6e/v7x).
    o_ref[...] = m + s * g


def _largest_divisor_leq(n, cap, multiple_of=1):
    """Largest divisor of n that is <= cap and a multiple of `multiple_of` (or None)."""
    cap = min(cap, n)
    best = None
    d = 1
    while d * d <= n:
        if n % d == 0:
            for q in (d, n // d):
                if q <= cap and q % multiple_of == 0 and (best is None or q > best):
                    best = q
        d += 1
    return best


def _pick_batch_block(batch, bytes_per_row):
    """Batch block: full batch if it fits the budget, else a sublane-friendly divisor."""
    cap = max(1, _X_BLOCK_BYTES // max(1, bytes_per_row))
    if batch <= cap:
        return batch                      # single grid step; full-extent block is always legal
    cap8 = (cap // _SUBLANES) * _SUBLANES
    bb = _largest_divisor_leq(batch, cap8, multiple_of=_SUBLANES) if cap8 >= _SUBLANES else None
    if bb is None:
        # TODO(synk): pathological batch sizes (e.g. large primes) fall back to a
        # sublane-suboptimal (but correct) block.
        bb = _largest_divisor_leq(batch, cap, multiple_of=1) or 1
    return bb


def _bottleneck_2d(x2d, gaussian_nums, latent_dim):
    """x2d: (B, >= 2*latent_dim); gaussian_nums: (latent_dim,). Returns (B, latent_dim)."""
    batch = x2d.shape[0]
    L = int(latent_dim)
    dtype = x2d.dtype
    g = gaussian_nums.astype(dtype)

    if x2d.shape[1] != 2 * L:
        x2d = x2d[:, :2 * L]

    out_cols = None
    if L % _LANES != 0:
        # Pad the lane dimension up to the next multiple of 128 (keeps stores unmasked).
        # TODO(synk): this rare path materializes padded means/stddev copies in HBM.
        Lp = ((L + _LANES - 1) // _LANES) * _LANES
        pad = Lp - L
        means = jnp.pad(x2d[:, :L], ((0, 0), (0, pad)))
        stddev = jnp.pad(x2d[:, L:2 * L], ((0, 0), (0, pad)))
        x2d = jnp.concatenate([means, stddev], axis=-1)
        g = jnp.pad(g, (0, pad))
        out_cols = L
        L = Lp

    itemsize = jnp.dtype(dtype).itemsize
    bb = _pick_batch_block(batch, 2 * L * itemsize)
    grid = (batch // bb,)

    kernel = functools.partial(_vae_bottleneck_kernel, L)

    out = pl.pallas_call(
        kernel,
        out_shape=jax.ShapeDtypeStruct((batch, L), dtype),
        grid=grid,
        in_specs=[
            # x is read once, straight from HBM (no wrapper means/stddev copies).
            pl.BlockSpec((bb, 2 * L), lambda b: (b, 0)),
            # Constant block index -> gaussian block is fetched once and reused.
            pl.BlockSpec((1, L), lambda b: (0, 0)),
        ],
        out_specs=pl.BlockSpec((bb, L), lambda b: (b, 0)),
        compiler_params=pltpu.CompilerParams(
            dimension_semantics=("parallel",)),
    )(x2d, g[None, :])

    if out_cols is not None:
        out = out[:, :out_cols]
    return out


def vae_bottleneck(x, gaussian_nums, latent_dim=256):
    """Exact equivalent of VAEBottleNeck.forward for a 1-D x of length >= 2*latent_dim."""
    return _bottleneck_2d(x[None, :], gaussian_nums, latent_dim)[0]


def vae_bottleneck_batched(x, gaussian_nums, latent_dim=256):
    """Batched variant: x is (B, >= 2*latent_dim); one pallas_call for all B samples."""
    return _bottleneck_2d(x, gaussian_nums, latent_dim)


if __name__ == "__main__":
    latent_dim = 256  # module default

    key = jax.random.PRNGKey(0)
    kx, kg, kb, kx2, kg2 = jax.random.split(key, 5)

    # Deterministic "parameter" init (torch.randn equivalent).
    gaussian_nums = jax.random.normal(kg, (latent_dim,), dtype=jnp.float32)

    # --- single-sample path (matches the torch module forward exactly) ---
    x = jax.random.normal(kx, (2 * latent_dim,), dtype=jnp.float32)
    out = jax.block_until_ready(vae_bottleneck(x, gaussian_nums, latent_dim))
    ref = x[:latent_dim] + x[latent_dim:2 * latent_dim] * gaussian_nums
    assert out.shape == (latent_dim,)
    assert jnp.allclose(out, ref, atol=1e-6, rtol=1e-6)

    # --- batched path (amortizes launch/DMA overhead over B samples) ---
    B = 8
    xb = jax.random.normal(kb, (B, 2 * latent_dim), dtype=jnp.float32)
    outb = jax.block_until_ready(vae_bottleneck_batched(xb, gaussian_nums, latent_dim))
    refb = xb[:, :latent_dim] + xb[:, latent_dim:2 * latent_dim] * gaussian_nums
    assert outb.shape == (B, latent_dim)
    assert jnp.allclose(outb, refb, atol=1e-6, rtol=1e-6)

    # --- non-multiple-of-128 latent (exercises the lane-padding path) ---
    L2, B2 = 192, 4
    g2 = jax.random.normal(kg2, (L2,), dtype=jnp.float32)
    x2 = jax.random.normal(kx2, (B2, 2 * L2), dtype=jnp.float32)
    out2 = jax.block_until_ready(vae_bottleneck_batched(x2, g2, L2))
    ref2 = x2[:, :L2] + x2[:, L2:2 * L2] * g2
    assert out2.shape == (B2, L2)
    assert jnp.allclose(out2, ref2, atol=1e-6, rtol=1e-6)

    print("KERNEL_OK")
</pallas_src>

<mosaic_0001>
module attributes {stable_mosaic.version = 11 : i64} {
  func.func @_vae_bottleneck_kernel(%arg0: i32, %arg1: memref<1x512xf32, #tpu.memory_space<vmem>>, %arg2: memref<1x256xf32, #tpu.memory_space<vmem>>, %arg3: memref<1x256xf32, #tpu.memory_space<vmem>>) attributes {dimension_semantics = [#tpu.dimension_semantics<parallel>], iteration_bounds = array<i64: 1>, scalar_prefetch = 0 : i64, scratch_operands = 0 : i64, tpu.core_type = #tpu.core_type<tc>, window_params = [{transform_indices = @transform_0, window_bounds = array<i64: 1, 512>}, {pipeline_mode = #tpu.pipeline_mode<synchronous>, transform_indices = @transform_1, window_bounds = array<i64: 1, 256>}, {transform_indices = @transform_2, window_bounds = array<i64: 1, 256>}]} {
    %c0 = arith.constant 0 : index
    %c0_0 = arith.constant 0 : index
    %0 = vector.load %arg1[%c0, %c0_0] : memref<1x512xf32, #tpu.memory_space<vmem>>, vector<1x256xf32>
    %c0_1 = arith.constant 0 : index
    %c256 = arith.constant 256 : index
    %1 = vector.load %arg1[%c0_1, %c256] : memref<1x512xf32, #tpu.memory_space<vmem>>, vector<1x256xf32>
    %c0_2 = arith.constant 0 : index
    %c0_3 = arith.constant 0 : index
    %2 = vector.load %arg2[%c0_2, %c0_3] : memref<1x256xf32, #tpu.memory_space<vmem>>, vector<1x256xf32>
    %3 = arith.mulf %1, %2 : vector<1x256xf32>
    %4 = arith.addf %0, %3 : vector<1x256xf32>
    %c0_4 = arith.constant 0 : index
    %c0_5 = arith.constant 0 : index
    %5 = vector.load %arg3[%c0_4, %c0_5] : memref<1x256xf32, #tpu.memory_space<vmem>>, vector<1x256xf32>
    tpu.vector_store %arg3[%c0_4, %c0_5], %4 {strides = array<i32>} : memref<1x256xf32, #tpu.memory_space<vmem>>, vector<1x256xf32>,
    return
  }
  func.func @transform_0(%arg0: i32) -> (i32, i32) {
    %c0_i32 = arith.constant 0 : i32
    %c0_i32_0 = arith.constant 0 : i32
    return %arg0, %c0_i32 : i32, i32
  }
  func.func @transform_1(%arg0: i32) -> (i32, i32) {
    %c0_i32 = arith.constant 0 : i32
    %c0_i32_0 = arith.constant 0 : i32
    %c0_i32_1 = arith.constant 0 : i32
    return %c0_i32, %c0_i32_0 : i32, i32
  }
  func.func @transform_2(%arg0: i32) -> (i32, i32) {
    %c0_i32 = arith.constant 0 : i32
    %c0_i32_0 = arith.constant 0 : i32
    return %arg0, %c0_i32 : i32, i32
  }
}

</mosaic_0001>

<bundles_post_ra>
// kernel: tpu_custom_call.1
= control target key start
LH: loop header
LB: loop body
LE: loop exit
PB: predicated region body
PF: predicated region fallthrough
CT: control target
= control target key end

     0   :  { %7 = vsyncpa [#allocation3], 0  ;;  %s158_s0 = inlined_call_operand.hbm [shape: f32[1,512], index: 0, kind: input, shape index: {}]   ;;  %s159_s1 = inlined_call_operand.hbm [shape: f32[1,256], index: 1, kind: input, shape index: {}]   ;;  %s160_s2 = inlined_call_operand.hbm [shape: f32[1,256], index: 2, kind: output, shape index: {}]  }
   0x1   :  { %8 = vsyncpa [#allocation6], 0 }
   0x2   :  { %9 = vsyncpa [#allocation4], 0  ;;  %s131_s9 = smov [#allocation2]   ;;  %s132_s11 = smov [#allocation5]  }
   0x3   :  { %s16_s10 = sshll.u32 %s131_s9, 4  ;;  %s26_s12 = sshll.u32 %s132_s11, 4  ;;  %s17_s10 = int_to_ptr.vmem [resolvable:$true] %s16_s10  ;;  %s27_s12 = int_to_ptr.vmem [resolvable:$true] %s26_s12 }
   0x4   :  { %s73_s13 = scalar_lea.vmem %s17_s10, 64  ;;  %p78_p1 = scmp.lt.s32.totalorder %s17_s10, %s17_s10 }
   0x5   :  { %p74_p0 = scmp.ne.s32.totalorder %s17_s10, %s73_s13  ;;  %p79_p2 = scmp.lt.s32.totalorder %s73_s13, %s73_s13 }
   0x7   :  { %p80_p3 = por %p79_p2, %p78_p1 }
   0x9   :  { %p81_p4 = pnand %p80_p3, %p74_p0 }
   0xb   :  { %84 = shalt.err (!%p81_p4)
}
   0xc   :  { %19 = dma.hbm_to_vmem [thread:$0]  %s158_s0, 64, %s17_s10, [#allocation3]  }
   0xd   :  { %s93_s16 = scalar_lea.vmem %s27_s12, 32  ;;  %p98_p6 = scmp.lt.s32.totalorder %s27_s12, %s27_s12 }
   0xe   :  { %p94_p5 = scmp.ne.s32.totalorder %s27_s12, %s93_s16  ;;  %p99_p7 = scmp.lt.s32.totalorder %s93_s16, %s93_s16 }
  0x10   :  { %p100_p8 = por %p99_p7, %p98_p6 }
  0x12   :  { %p101_p9 = pnand %p100_p8, %p94_p5 }
  0x14   :  { %104 = shalt.err (!%p101_p9)
}
  0x15   :  { %29 = dma.hbm_to_vmem [thread:$0]  %s159_s1, 32, %s27_s12, [#allocation6]  }
  0x16   :  { %125 = dma.done.wait [#allocation3], 64  }
  0x17   :  { %126 = vsyncadd [#allocation3], 4294967232 }
  0x18   :  { %127 = dma.done.wait [#allocation6], 32  }
  0x19   :  { %128 = vsyncadd [#allocation6], 4294967264  ;;  %v41_v0 = vlaneseq  ;;  %s133_s19 = smov [#allocation7]   ;;  %v36_v1 = vld [vmem:[#allocation2] sm:$0x3] }
  0x1a   :  { %s52_s20 = sshll.u32 %s133_s19, 4  ;;  %v37_v2 = vld [vmem:[#allocation2 + $0x2] sm:$0x3]  ;;  %v38_v3 = vld [vmem:[#allocation5] sm:$0x3]  ;;  %s53_s20 = int_to_ptr.vmem [resolvable:$true] %s52_s20 }
  0x1b   :  { %v39_v4 = vmul.f32 %v38_v3, %v37_v2  ;;  %vm43_vm0 = vcmp.lt.s32.totalorder %v41_v0, 256  ;;  %s105_s0 = scalar_lea.vmem %s53_s20, 32  ;;  %p110_p11 = scmp.lt.s32.totalorder %s53_s20, %s53_s20 }
  0x1c   :  { %p106_p10 = scmp.ne.s32.totalorder %s53_s20, %s105_s0  ;;  %p111_p12 = scmp.lt.s32.totalorder %s105_s0, %s105_s0 }
  0x1d   :  { %v40_v5 = vadd.f32 %v39_v4, %v36_v1 }
  0x1e   :  { %p112_p13 = por %p111_p12, %p110_p11 }
  0x1f   :  { %45 = vst.msk [vmem:[#allocation7] sm:$0x3] %vm43_vm0, %v40_v5 }
  0x20   :  { %p113_p0 = pnand %p112_p13, %p106_p10 }
  0x22   :  { %116 = shalt.err (!%p113_p0)
}
  0x23   :  { %55 = dma.vmem_to_hbm [thread:$0]  %s53_s20, 32, %s160_s2, [#allocation4]  }
  0x24   :  { %129 = dma.done.wait [#allocation4], 32  }
  0x25   :  { %130 = vsyncadd [#allocation4], 4294967264 }
  0x26   :  { %59 = vsyncpa [#allocation3], 1 }
  0x27   :  { %60 = vsyncpa [#allocation6], 1 }
  0x28   :  { %61 = vsyncpa [#allocation4], 1 }

</bundles_post_ra>
